<compile_context>
chip_gen: v5e
topology: v5e:2x2
jax: 0.10.0
libtpu: 0.0.40
codegen_flags: <defaults>
</compile_context>

<pallas_src>
import numpy as np
import jax
import jax.numpy as jnp
from jax.experimental import pallas as pl
from jax.experimental.pallas import tpu as pltpu

CLASS_NUM = 4
IGNORE_LB = 255
EPS = 1e-7
TARGET_PX = 131072          # pixels per grid step (~2 MiB of f32 logits)


def _cdiv(a, b):
    return -(-a // b)


def _round_up(x, m):
    return _cdiv(x, m) * m


def loss_kernel(meta_ref, logit_ref, lab_ref, loss_out_ref, cnt_out_ref,
                loss_acc, cnt_acc):
    """One (image, chunk, row-block) step.

    meta_ref  : SMEM int32 [absent_0..absent_3, Flag, HW]
    logit_ref : (C, S, L) logits tile (input dtype, upcast here)
    lab_ref   : (S, L) int32 labels tile
    """
    p = pl.program_id(2)

    @pl.when(p == 0)
    def _():
        loss_acc[...] = jnp.zeros_like(loss_acc)
        cnt_acc[...] = jnp.zeros_like(cnt_acc)

    lab = lab_ref[...]                                        # (S, L) int32
    xs = [logit_ref[c].astype(jnp.float32) for c in range(CLASS_NUM)]

    # Softmax pieces: class axis is the leading (non-vreg) axis, so these
    # reductions are 3 elementwise VPU ops over dense (S, L) vregs.
    m = xs[0]
    for c in range(1, CLASS_NUM):
        m = jnp.maximum(m, xs[c])
    es = [jnp.exp(xs[c] - m) for c in range(CLASS_NUM)]
    denom = es[0]
    for c in range(1, CLASS_NUM):
        denom = denom + es[c]

    is_ign = lab == IGNORE_LB
    is_ign_f = is_ign.astype(jnp.float32)
    flag_f = meta_ref[CLASS_NUM].astype(jnp.float32)

    # Fused foreground/background numerator:
    #   w_c = 1[label==c] + 1[label==255] * absent_c
    sel_e = jnp.zeros_like(denom)
    for c in range(CLASS_NUM):
        w_c = (lab == c).astype(jnp.float32) \
            + is_ign_f * meta_ref[c].astype(jnp.float32)
        sel_e = sel_e + es[c] * w_c

    # Ragged-tail mask from the flat pixel index (no HBM padding copies).
    s_blk, l_blk = lab.shape
    rb = pl.program_id(1) * pl.num_programs(2) + p            # global row block
    row = jax.lax.broadcasted_iota(jnp.int32, lab.shape, 0)
    col = jax.lax.broadcasted_iota(jnp.int32, lab.shape, 1)
    pix = (rb * s_blk + row) * l_blk + col
    in_range = pix < meta_ref[CLASS_NUM + 1]

    valid = jnp.where(is_ign, flag_f, 1.0)                    # (S, L) f32
    # -log(p + EPS) == log(denom) - log(sel_e + EPS*denom): no divide, EUP logs.
    pix_loss = jnp.log(denom) - jnp.log(sel_e + EPS * denom)
    # Select (not multiply) so inf/NaN from garbage out-of-range pixels is dropped.
    loss_acc[...] = loss_acc[...] + jnp.where(in_range, valid * pix_loss, 0.0)
    cnt_acc[...] = cnt_acc[...] + jnp.where(in_range, valid, 0.0)

    @pl.when(p == pl.num_programs(2) - 1)
    def _():
        loss_out_ref[...] = jnp.sum(loss_acc[...]).reshape(1, 1, 1, 1)
        cnt_out_ref[...] = jnp.sum(cnt_acc[...]).reshape(1, 1, 1, 1)


def back_ce_loss(logits_nchw, labels_nhw, *, target_px=TARGET_PX):
    N, C, H, W = logits_nchw.shape
    assert C == CLASS_NUM
    HW = H * W

    labels_i = labels_nhw.astype(jnp.int32)

    # Class presence / Flag: one fused XLA reduction over the raw labels.
    lab_flat = labels_i.reshape(-1)
    present = jnp.any(
        lab_flat[None, :] == jnp.arange(CLASS_NUM, dtype=jnp.int32)[:, None],
        axis=1)
    absent = jnp.logical_not(present)
    meta = jnp.concatenate([
        absent.astype(jnp.int32),                    # absent_0..absent_3
        jnp.any(absent).astype(jnp.int32)[None],     # Flag
        jnp.array([HW], jnp.int32),                  # number of real pixels
    ])

    # Lane width: largest multiple of 128 dividing HW -> free contiguous reshape.
    lane = next((l for l in (1024, 512, 256, 128) if HW % l == 0), 0)
    logits_r = logits_nchw.reshape(N, C, HW)         # keep input dtype (bf16 ok)
    labels_r = labels_i.reshape(N, HW)
    if lane == 0:
        # TODO(synk): HW not a multiple of 128 (rare); pad once to 128 lanes.
        lane = 128
        hw_pad = _round_up(HW, lane)
        logits_r = jnp.pad(logits_r, ((0, 0), (0, 0), (0, hw_pad - HW)))
        labels_r = jnp.pad(labels_r, ((0, 0), (0, hw_pad - HW)))
    else:
        hw_pad = HW
    n_rows = hw_pad // lane
    logits_r = logits_r.reshape(N, C, n_rows, lane)
    labels_r = labels_r.reshape(N, n_rows, lane)

    # Sublane tile: big enough for ~target_px pixels per grid step.
    s_tile = min(n_rows, max(8, _round_up(max(1, target_px // lane), 8)))
    n_blocks = _cdiv(n_rows, s_tile)
    nchunk = 2 if n_blocks >= 2 else 1               # 2 parallel pixel chunks (v7x)
    bpc = _cdiv(n_blocks, nchunk)

    def rb_of(c, p):
        # Clamp so fully-out-of-range blocks DMA a valid block; their
        # contribution is zeroed in-kernel by the flat pixel-index mask.
        return jnp.minimum(c * bpc + p, n_blocks - 1)

    grid = (N, nchunk, bpc)

    cost = pl.CostEstimate(
        flops=int(N * hw_pad * 10 * CLASS_NUM),
        transcendentals=int(N * hw_pad * (CLASS_NUM + 2)),
        bytes_accessed=int(
            N * hw_pad * (CLASS_NUM * logits_nchw.dtype.itemsize + 4)),
    )

    loss_part, cnt_part = pl.pallas_call(
        loss_kernel,
        out_shape=(jax.ShapeDtypeStruct((N, nchunk, 1, 1), jnp.float32),
                   jax.ShapeDtypeStruct((N, nchunk, 1, 1), jnp.float32)),
        grid_spec=pltpu.PrefetchScalarGridSpec(
            num_scalar_prefetch=1,
            grid=grid,
            in_specs=[
                pl.BlockSpec((pl.Squeezed(), CLASS_NUM, s_tile, lane),
                             lambda n, c, p, sref: (n, 0, rb_of(c, p), 0)),
                pl.BlockSpec((pl.Squeezed(), s_tile, lane),
                             lambda n, c, p, sref: (n, rb_of(c, p), 0)),
            ],
            out_specs=(
                pl.BlockSpec((1, 1, 1, 1), lambda n, c, p, sref: (n, c, 0, 0)),
                pl.BlockSpec((1, 1, 1, 1), lambda n, c, p, sref: (n, c, 0, 0)),
            ),
            scratch_shapes=[pltpu.VMEM((s_tile, lane), jnp.float32),
                            pltpu.VMEM((s_tile, lane), jnp.float32)],
        ),
        compiler_params=pltpu.CompilerParams(
            dimension_semantics=("parallel", "parallel", "arbitrary")),
        cost_estimate=cost,
    )(meta, logits_r, labels_r)

    return jnp.sum(loss_part) / jnp.sum(cnt_part)


def ref_loss_numpy(logits, labels):
    """Direct numpy transliteration of the torch forward (for verification)."""
    logits = np.asarray(logits, np.float32)
    labels = np.asarray(labels).astype(np.int64)
    ex = np.exp(logits - logits.max(axis=1, keepdims=True))
    probs = ex / ex.sum(axis=1, keepdims=True)
    total = np.unique(labels)
    new_labels = labels.copy()
    fore, back = [], []
    for l in range(CLASS_NUM):
        if l in total:
            fore.append(probs[:, l:l + 1])
        else:
            back.append(probs[:, l:l + 1])
    flag = len(fore) != CLASS_NUM
    if flag:
        fore.append(sum(back))
    for i, l in enumerate(total):
        if flag:
            new_labels[labels == l] = i
        elif l != IGNORE_LB:
            new_labels[labels == l] = i
    probs_cat = np.concatenate(fore, axis=1)
    logp = np.log(probs_cat + EPS)
    cprime = logp.shape[1]
    mask = new_labels != IGNORE_LB
    idx = np.clip(new_labels, 0, cprime - 1)[:, None]
    gathered = np.take_along_axis(logp, idx, axis=1)[:, 0]
    return float(-(gathered * mask).sum() / mask.sum())


if __name__ == "__main__":
    key = jax.random.PRNGKey(0)
    k1, k2, k3, k4 = jax.random.split(key, 4)

    N, C, H, W = 2, 4, 16, 16
    logits = jax.random.normal(k1, (N, C, H, W), dtype=jnp.float32)

    # Case 1: class 3 absent -> Flag path (255 pixels hit the background channel).
    base1 = jax.random.randint(k2, (N, H, W), 0, 3)
    ign_mask = jax.random.uniform(k3, (N, H, W)) < 0.1
    labels_flag = jnp.where(ign_mask, IGNORE_LB, base1).astype(jnp.int32)

    # Case 2: all classes present -> Flag False (255 pixels are ignored).
    base2 = jax.random.randint(k4, (N, H, W), 0, 4)
    labels_noflag = jnp.where(ign_mask, IGNORE_LB, base2).astype(jnp.int32)

    loss_fn = jax.jit(back_ce_loss)
    for labels in (labels_flag, labels_noflag):
        loss = jax.block_until_ready(loss_fn(logits, labels))
        ref = ref_loss_numpy(logits, labels)
        assert np.allclose(float(loss), ref, rtol=1e-4, atol=1e-5), (float(loss), ref)

    print("KERNEL_OK")
</pallas_src>

<mosaic_0001>
module attributes {stable_mosaic.version = 11 : i64} {
  func.func @loss_kernel(%arg0: i32, %arg1: i32, %arg2: i32, %arg3: memref<6xi32, #tpu.memory_space<smem>>, %arg4: memref<1x4x1x256xf32, #tpu.memory_space<vmem>>, %arg5: memref<1x1x256xi32, #tpu.memory_space<vmem>>, %arg6: memref<1x1x1x1xf32, #tpu.memory_space<vmem>>, %arg7: memref<1x1x1x1xf32, #tpu.memory_space<vmem>>, %arg8: memref<1x256xf32, #tpu.memory_space<vmem>>, %arg9: memref<1x256xf32, #tpu.memory_space<vmem>>) attributes {dimension_semantics = [#tpu.dimension_semantics<parallel>, #tpu.dimension_semantics<parallel>, #tpu.dimension_semantics<arbitrary>], iteration_bounds = array<i64: 2, 1, 1>, scalar_prefetch = 1 : i64, scratch_operands = 2 : i64, tpu.core_type = #tpu.core_type<tc>, window_params = [{transform_indices = @transform_0, window_bounds = array<i64: 1, 4, 1, 256>}, {transform_indices = @transform_1, window_bounds = array<i64: 1, 1, 256>}, {transform_indices = @transform_2, window_bounds = array<i64: 1, 1, 1, 1>}, {transform_indices = @transform_3, window_bounds = array<i64: 1, 1, 1, 1>}]} {
    %c0_i32 = arith.constant 0 : i32
    %0 = arith.cmpi eq, %arg2, %c0_i32 : i32
    %1 = arith.extui %0 : i1 to i32
    %c0_i32_0 = arith.constant 0 : i32
    %2 = arith.cmpi ne, %1, %c0_i32_0 : i32
    scf.if %2 {
      %cst_37 = arith.constant 0.000000e+00 : f32
      %114 = vector.broadcast %cst_37 : f32 to vector<1x256xf32>
      %c0_38 = arith.constant 0 : index
      %c0_39 = arith.constant 0 : index
      %115 = vector.load %arg8[%c0_38, %c0_39] : memref<1x256xf32, #tpu.memory_space<vmem>>, vector<1x256xf32>
      tpu.vector_store %arg8[%c0_38, %c0_39], %114 {strides = array<i32>} : memref<1x256xf32, #tpu.memory_space<vmem>>, vector<1x256xf32>,
      %cst_40 = arith.constant 0.000000e+00 : f32
      %116 = vector.broadcast %cst_40 : f32 to vector<1x256xf32>
      %c0_41 = arith.constant 0 : index
      %c0_42 = arith.constant 0 : index
      %117 = vector.load %arg9[%c0_41, %c0_42] : memref<1x256xf32, #tpu.memory_space<vmem>>, vector<1x256xf32>
      tpu.vector_store %arg9[%c0_41, %c0_42], %116 {strides = array<i32>} : memref<1x256xf32, #tpu.memory_space<vmem>>, vector<1x256xf32>,
    } else {
    }
    %c0 = arith.constant 0 : index
    %c0_1 = arith.constant 0 : index
    %c0_2 = arith.constant 0 : index
    %3 = vector.load %arg5[%c0, %c0_1, %c0_2] : memref<1x1x256xi32, #tpu.memory_space<vmem>>, vector<1x1x256xi32>
    %4 = vector.shape_cast %3 : vector<1x1x256xi32> to vector<1x256xi32>
    %c0_3 = arith.constant 0 : index
    %c0_4 = arith.constant 0 : index
    %c0_5 = arith.constant 0 : index
    %c0_6 = arith.constant 0 : index
    %5 = vector.load %arg4[%c0_3, %c0_4, %c0_5, %c0_6] : memref<1x4x1x256xf32, #tpu.memory_space<vmem>>, vector<1x1x1x256xf32>
    %6 = vector.shape_cast %5 : vector<1x1x1x256xf32> to vector<1x256xf32>
    %c0_7 = arith.constant 0 : index
    %c1 = arith.constant 1 : index
    %c0_8 = arith.constant 0 : index
    %c0_9 = arith.constant 0 : index
    %7 = vector.load %arg4[%c0_7, %c1, %c0_8, %c0_9] : memref<1x4x1x256xf32, #tpu.memory_space<vmem>>, vector<1x1x1x256xf32>
    %8 = vector.shape_cast %7 : vector<1x1x1x256xf32> to vector<1x256xf32>
    %c0_10 = arith.constant 0 : index
    %c2 = arith.constant 2 : index
    %c0_11 = arith.constant 0 : index
    %c0_12 = arith.constant 0 : index
    %9 = vector.load %arg4[%c0_10, %c2, %c0_11, %c0_12] : memref<1x4x1x256xf32, #tpu.memory_space<vmem>>, vector<1x1x1x256xf32>
    %10 = vector.shape_cast %9 : vector<1x1x1x256xf32> to vector<1x256xf32>
    %c0_13 = arith.constant 0 : index
    %c3 = arith.constant 3 : index
    %c0_14 = arith.constant 0 : index
    %c0_15 = arith.constant 0 : index
    %11 = vector.load %arg4[%c0_13, %c3, %c0_14, %c0_15] : memref<1x4x1x256xf32, #tpu.memory_space<vmem>>, vector<1x1x1x256xf32>
    %12 = vector.shape_cast %11 : vector<1x1x1x256xf32> to vector<1x256xf32>
    %13 = arith.maximumf %6, %8 : vector<1x256xf32>
    %14 = arith.maximumf %13, %10 : vector<1x256xf32>
    %15 = arith.maximumf %14, %12 : vector<1x256xf32>
    %16 = arith.subf %6, %15 : vector<1x256xf32>
    %17 = math.exp %16 : vector<1x256xf32>
    %18 = arith.subf %8, %15 : vector<1x256xf32>
    %19 = math.exp %18 : vector<1x256xf32>
    %20 = arith.subf %10, %15 : vector<1x256xf32>
    %21 = math.exp %20 : vector<1x256xf32>
    %22 = arith.subf %12, %15 : vector<1x256xf32>
    %23 = math.exp %22 : vector<1x256xf32>
    %24 = arith.addf %17, %19 : vector<1x256xf32>
    %25 = arith.addf %24, %21 : vector<1x256xf32>
    %26 = arith.addf %25, %23 : vector<1x256xf32>
    %c255_i32 = arith.constant 255 : i32
    %27 = vector.broadcast %c255_i32 : i32 to vector<1x256xi32>
    %28 = arith.cmpi eq, %4, %27 : vector<1x256xi32>
    %29 = arith.extui %28 : vector<1x256xi1> to vector<1x256xi32>
    %30 = arith.sitofp %29 : vector<1x256xi32> to vector<1x256xf32>
    %c4 = arith.constant 4 : index
    %31 = memref.load %arg3[%c4] : memref<6xi32, #tpu.memory_space<smem>>
    %32 = arith.sitofp %31 : i32 to f32
    %cst = arith.constant 0.000000e+00 : f32
    %33 = vector.broadcast %cst : f32 to vector<1x256xf32>
    %c0_i32_16 = arith.constant 0 : i32
    %34 = vector.broadcast %c0_i32_16 : i32 to vector<1x256xi32>
    %35 = arith.cmpi eq, %4, %34 : vector<1x256xi32>
    %36 = arith.extui %35 : vector<1x256xi1> to vector<1x256xi32>
    %37 = arith.sitofp %36 : vector<1x256xi32> to vector<1x256xf32>
    %c0_17 = arith.constant 0 : index
    %38 = memref.load %arg3[%c0_17] : memref<6xi32, #tpu.memory_space<smem>>
    %39 = arith.sitofp %38 : i32 to f32
    %40 = vector.broadcast %39 : f32 to vector<1x256xf32>
    %41 = arith.mulf %30, %40 : vector<1x256xf32>
    %42 = arith.addf %37, %41 : vector<1x256xf32>
    %43 = arith.mulf %17, %42 : vector<1x256xf32>
    %44 = arith.addf %33, %43 : vector<1x256xf32>
    %c1_i32 = arith.constant 1 : i32
    %45 = vector.broadcast %c1_i32 : i32 to vector<1x256xi32>
    %46 = arith.cmpi eq, %4, %45 : vector<1x256xi32>
    %47 = arith.extui %46 : vector<1x256xi1> to vector<1x256xi32>
    %48 = arith.sitofp %47 : vector<1x256xi32> to vector<1x256xf32>
    %c1_18 = arith.constant 1 : index
    %49 = memref.load %arg3[%c1_18] : memref<6xi32, #tpu.memory_space<smem>>
    %50 = arith.sitofp %49 : i32 to f32
    %51 = vector.broadcast %50 : f32 to vector<1x256xf32>
    %52 = arith.mulf %30, %51 : vector<1x256xf32>
    %53 = arith.addf %48, %52 : vector<1x256xf32>
    %54 = arith.mulf %19, %53 : vector<1x256xf32>
    %55 = arith.addf %44, %54 : vector<1x256xf32>
    %c2_i32 = arith.constant 2 : i32
    %56 = vector.broadcast %c2_i32 : i32 to vector<1x256xi32>
    %57 = arith.cmpi eq, %4, %56 : vector<1x256xi32>
    %58 = arith.extui %57 : vector<1x256xi1> to vector<1x256xi32>
    %59 = arith.sitofp %58 : vector<1x256xi32> to vector<1x256xf32>
    %c2_19 = arith.constant 2 : index
    %60 = memref.load %arg3[%c2_19] : memref<6xi32, #tpu.memory_space<smem>>
    %61 = arith.sitofp %60 : i32 to f32
    %62 = vector.broadcast %61 : f32 to vector<1x256xf32>
    %63 = arith.mulf %30, %62 : vector<1x256xf32>
    %64 = arith.addf %59, %63 : vector<1x256xf32>
    %65 = arith.mulf %21, %64 : vector<1x256xf32>
    %66 = arith.addf %55, %65 : vector<1x256xf32>
    %c3_i32 = arith.constant 3 : i32
    %67 = vector.broadcast %c3_i32 : i32 to vector<1x256xi32>
    %68 = arith.cmpi eq, %4, %67 : vector<1x256xi32>
    %69 = arith.extui %68 : vector<1x256xi1> to vector<1x256xi32>
    %70 = arith.sitofp %69 : vector<1x256xi32> to vector<1x256xf32>
    %c3_20 = arith.constant 3 : index
    %71 = memref.load %arg3[%c3_20] : memref<6xi32, #tpu.memory_space<smem>>
    %72 = arith.sitofp %71 : i32 to f32
    %73 = vector.broadcast %72 : f32 to vector<1x256xf32>
    %74 = arith.mulf %30, %73 : vector<1x256xf32>
    %75 = arith.addf %70, %74 : vector<1x256xf32>
    %76 = arith.mulf %23, %75 : vector<1x256xf32>
    %77 = arith.addf %66, %76 : vector<1x256xf32>
    %c1_i32_21 = arith.constant 1 : i32
    %78 = arith.muli %arg1, %c1_i32_21 : i32
    %79 = arith.addi %78, %arg2 : i32
    %80 = tpu.iota {dimensions = array<i32: 0>} : vector<1x256xi32>
    %81 = tpu.iota {dimensions = array<i32: 1>} : vector<1x256xi32>
    %c1_i32_22 = arith.constant 1 : i32
    %82 = arith.muli %79, %c1_i32_22 : i32
    %83 = vector.broadcast %82 : i32 to vector<1x256xi32>
    %84 = arith.addi %83, %80 : vector<1x256xi32>
    %c256_i32 = arith.constant 256 : i32
    %85 = vector.broadcast %c256_i32 : i32 to vector<1x256xi32>
    %86 = arith.muli %84, %85 : vector<1x256xi32>
    %87 = arith.addi %86, %81 : vector<1x256xi32>
    %c5 = arith.constant 5 : index
    %88 = memref.load %arg3[%c5] : memref<6xi32, #tpu.memory_space<smem>>
    %89 = vector.broadcast %88 : i32 to vector<1x256xi32>
    %90 = arith.cmpi slt, %87, %89 : vector<1x256xi32>
    %cst_23 = arith.constant 1.000000e+00 : f32
    %91 = vector.broadcast %32 : f32 to vector<1x256xf32>
    %92 = vector.broadcast %cst_23 : f32 to vector<1x256xf32>
    %93 = arith.select %28, %91, %92 : vector<1x256xi1>, vector<1x256xf32>
    %94 = math.log %26 : vector<1x256xf32>
    %cst_24 = arith.constant 1.000000e-07 : f32
    %95 = vector.broadcast %cst_24 : f32 to vector<1x256xf32>
    %96 = arith.mulf %95, %26 : vector<1x256xf32>
    %97 = arith.addf %77, %96 : vector<1x256xf32>
    %98 = math.log %97 : vector<1x256xf32>
    %99 = arith.subf %94, %98 : vector<1x256xf32>
    %c0_25 = arith.constant 0 : index
    %c0_26 = arith.constant 0 : index
    %100 = vector.load %arg8[%c0_25, %c0_26] : memref<1x256xf32, #tpu.memory_space<vmem>>, vector<1x256xf32>
    %101 = arith.mulf %93, %99 : vector<1x256xf32>
    %cst_27 = arith.constant 0.000000e+00 : f32
    %102 = vector.broadcast %cst_27 : f32 to vector<1x256xf32>
    %103 = arith.select %90, %101, %102 : vector<1x256xi1>, vector<1x256xf32>
    %104 = arith.addf %100, %103 : vector<1x256xf32>
    %c0_28 = arith.constant 0 : index
    %c0_29 = arith.constant 0 : index
    %105 = vector.load %arg8[%c0_28, %c0_29] : memref<1x256xf32, #tpu.memory_space<vmem>>, vector<1x256xf32>
    tpu.vector_store %arg8[%c0_28, %c0_29], %104 {strides = array<i32>} : memref<1x256xf32, #tpu.memory_space<vmem>>, vector<1x256xf32>,
    %c0_30 = arith.constant 0 : index
    %c0_31 = arith.constant 0 : index
    %106 = vector.load %arg9[%c0_30, %c0_31] : memref<1x256xf32, #tpu.memory_space<vmem>>, vector<1x256xf32>
    %cst_32 = arith.constant 0.000000e+00 : f32
    %107 = vector.broadcast %cst_32 : f32 to vector<1x256xf32>
    %108 = arith.select %90, %93, %107 : vector<1x256xi1>, vector<1x256xf32>
    %109 = arith.addf %106, %108 : vector<1x256xf32>
    %c0_33 = arith.constant 0 : index
    %c0_34 = arith.constant 0 : index
    %110 = vector.load %arg9[%c0_33, %c0_34] : memref<1x256xf32, #tpu.memory_space<vmem>>, vector<1x256xf32>
    tpu.vector_store %arg9[%c0_33, %c0_34], %109 {strides = array<i32>} : memref<1x256xf32, #tpu.memory_space<vmem>>, vector<1x256xf32>,
    %c0_i32_35 = arith.constant 0 : i32
    %111 = arith.cmpi eq, %arg2, %c0_i32_35 : i32
    %112 = arith.extui %111 : i1 to i32
    %c0_i32_36 = arith.constant 0 : i32
    %113 = arith.cmpi ne, %112, %c0_i32_36 : i32
    scf.if %113 {
      %c0_37 = arith.constant 0 : index
      %c0_38 = arith.constant 0 : index
      %114 = vector.load %arg8[%c0_37, %c0_38] : memref<1x256xf32, #tpu.memory_space<vmem>>, vector<1x256xf32>
      %115 = vector.shape_cast %114 : vector<1x256xf32> to vector<1x1x256xf32>
      %cst_39 = arith.constant dense<0.000000e+00> : vector<1xf32>
      %116 = vector.multi_reduction <add>, %115, %cst_39 [1, 2] : vector<1x1x256xf32> to vector<1xf32>
      %117 = vector.shape_cast %116 : vector<1xf32> to vector<1x1x1xf32>
      %118 = vector.extract %117[0, 0, 0] : f32 from vector<1x1x1xf32>
      %119 = vector.broadcast %118 : f32 to vector<1x1x1x1xf32>
      %c0_40 = arith.constant 0 : index
      %c0_41 = arith.constant 0 : index
      %c0_42 = arith.constant 0 : index
      %c0_43 = arith.constant 0 : index
      %120 = vector.load %arg6[%c0_40, %c0_41, %c0_42, %c0_43] : memref<1x1x1x1xf32, #tpu.memory_space<vmem>>, vector<1x1x1x1xf32>
      tpu.vector_store %arg6[%c0_40, %c0_41, %c0_42, %c0_43], %119 {strides = array<i32>} : memref<1x1x1x1xf32, #tpu.memory_space<vmem>>, vector<1x1x1x1xf32>,
      %c0_44 = arith.constant 0 : index
      %c0_45 = arith.constant 0 : index
      %121 = vector.load %arg9[%c0_44, %c0_45] : memref<1x256xf32, #tpu.memory_space<vmem>>, vector<1x256xf32>
      %122 = vector.shape_cast %121 : vector<1x256xf32> to vector<1x1x256xf32>
      %cst_46 = arith.constant dense<0.000000e+00> : vector<1xf32>
      %123 = vector.multi_reduction <add>, %122, %cst_46 [1, 2] : vector<1x1x256xf32> to vector<1xf32>
      %124 = vector.shape_cast %123 : vector<1xf32> to vector<1x1x1xf32>
      %125 = vector.extract %124[0, 0, 0] : f32 from vector<1x1x1xf32>
      %126 = vector.broadcast %125 : f32 to vector<1x1x1x1xf32>
      %c0_47 = arith.constant 0 : index
      %c0_48 = arith.constant 0 : index
      %c0_49 = arith.constant 0 : index
      %c0_50 = arith.constant 0 : index
      %127 = vector.load %arg7[%c0_47, %c0_48, %c0_49, %c0_50] : memref<1x1x1x1xf32, #tpu.memory_space<vmem>>, vector<1x1x1x1xf32>
      tpu.vector_store %arg7[%c0_47, %c0_48, %c0_49, %c0_50], %126 {strides = array<i32>} : memref<1x1x1x1xf32, #tpu.memory_space<vmem>>, vector<1x1x1x1xf32>,
    } else {
    }
    return
  }
  func.func @transform_0(%arg0: i32, %arg1: i32, %arg2: i32, %arg3: memref<6xi32, #tpu.memory_space<smem>>) -> (i32, i32, i32, i32) {
    %c1_i32 = arith.constant 1 : i32
    %0 = arith.muli %arg1, %c1_i32 : i32
    %1 = arith.addi %0, %arg2 : i32
    %c0_i32 = arith.constant 0 : i32
    %2 = arith.minsi %1, %c0_i32 : i32
    %c0_i32_0 = arith.constant 0 : i32
    %c0_i32_1 = arith.constant 0 : i32
    %c0_i32_2 = arith.constant 0 : i32
    return %arg0, %c0_i32_0, %2, %c0_i32_1 : i32, i32, i32, i32
  }
  func.func @transform_1(%arg0: i32, %arg1: i32, %arg2: i32, %arg3: memref<6xi32, #tpu.memory_space<smem>>) -> (i32, i32, i32) {
    %c1_i32 = arith.constant 1 : i32
    %0 = arith.muli %arg1, %c1_i32 : i32
    %1 = arith.addi %0, %arg2 : i32
    %c0_i32 = arith.constant 0 : i32
    %2 = arith.minsi %1, %c0_i32 : i32
    %c0_i32_0 = arith.constant 0 : i32
    %c0_i32_1 = arith.constant 0 : i32
    return %arg0, %2, %c0_i32_0 : i32, i32, i32
  }
  func.func @transform_2(%arg0: i32, %arg1: i32, %arg2: i32, %arg3: memref<6xi32, #tpu.memory_space<smem>>) -> (i32, i32, i32, i32) {
    %c0_i32 = arith.constant 0 : i32
    %c0_i32_0 = arith.constant 0 : i32
    %c0_i32_1 = arith.constant 0 : i32
    return %arg0, %arg1, %c0_i32, %c0_i32_0 : i32, i32, i32, i32
  }
  func.func @transform_3(%arg0: i32, %arg1: i32, %arg2: i32, %arg3: memref<6xi32, #tpu.memory_space<smem>>) -> (i32, i32, i32, i32) {
    %c0_i32 = arith.constant 0 : i32
    %c0_i32_0 = arith.constant 0 : i32
    %c0_i32_1 = arith.constant 0 : i32
    return %arg0, %arg1, %c0_i32, %c0_i32_0 : i32, i32, i32, i32
  }
}

</mosaic_0001>

<bundles_post_ra>
// kernel: eq.8
= control target key start
LH: loop header
LB: loop body
LE: loop exit
PB: predicated region body
PF: predicated region fallthrough
CT: control target
= control target key end

     0   :  { %s67_s8 = smov 112   ;;  %s68_s11 = smov 80   ;;  %vm3_vm0 = vcmask 130048   ;;  %vm9_vm1 = vcmask 1048448   ;;  %vm15_vm2 = vcmask 917248   ;;  %vm21_vm3 = vcmask 786048   ;;  %s111_s0 = inlined_call_operand.vmem [shape: s32[2,16,16], index: 0, kind: input, shape index: {}]   ;;  %s112_s1 = inlined_call_operand.vmem [shape: s32[512], index: 1, kind: output, shape index: {}]  }
   0x1   :  { %v53_v0 = vld [vmem:[%s111_s0 + $0x7] ss:$8 sm:$0xf]   ;;  %v55_v1 = vld [vmem:[%s111_s0 + $0x5] ss:$8 sm:$0xf]  }
   0x2   :  { %7 = vrot.lane.b32.xlu0 %v53_v0, %s67_s8  ;;  %19 = vrot.lane.b32.xlu1 %v55_v1, %s68_s11  ;;  %v57_v2 = vld [vmem:[%s111_s0 + $0x3] ss:$8 sm:$0xf]   ;;  %s69_s14 = smov 48   ;;  %s70_s19 = smov 96   ;;  %vm27_vm4 = vcmask 654848  }
   0x3   :  { %31 = vrot.lane.b32.xlu2 %v57_v2, %s69_s14  ;;  %v54_v3 = vld [vmem:[%s111_s0 + $0x6] ss:$8 sm:$0xf]   ;;  %v56_v4 = vld [vmem:[%s111_s0 + $0x4] ss:$8 sm:$0xf]  }
   0x4   :  { %s71_s20 = smov 64   ;;  %v58_v5 = vld [vmem:[%s111_s0 + $0x2] ss:$8 sm:$0xf]   ;;  %s72_s23 = smov 32   ;;  %vm33_vm5 = vcmask 523648  }
   0x5   :  { %v59_v6 = vld [vmem:[%s111_s0 + $0x1] ss:$8 sm:$0xf]   ;;  %s73_s26 = smov 16   ;;  %vm39_vm6 = vcmask 392448   ;;  %vm45_vm7 = vcmask 261248  }
   0x6   :  { %v2_v7 = vld [vmem:[%s111_s0] ss:$8 sm:$0xf]  }
   0x7   :  { %4 = vst.msk [vmem:[#allocation0] sm:$0xf] %vm3_vm0, %v2_v7  }
   0xa   :  { %13 = vrot.lane.b32.xlu0 %v54_v3, %s70_s19  ;;  %25 = vrot.lane.b32.xlu1 %v56_v4, %s71_s20 }
   0xb   :  { %37 = vrot.lane.b32.xlu2 %v58_v5, %s72_s23 }
  0x12   :  { %43 = vrot.lane.b32.xlu0 %v59_v6, %s73_s26 }
  0x5d   :  { %v32_v8 = vpop.permute.xlu2 %31  }
  0x65   :  { %v38_v9 = vpop.permute.xlu2 %37  }
  0x74   :  { %v8_v10 = vpop.permute.xlu0 %7   ;;  %v20_v11 = vpop.permute.xlu1 %19  }
  0x75   :  { %10 = vst.msk [vmem:[#allocation0] sm:$0xf] %vm9_vm1, %v8_v10  }
  0x7c   :  { %v14_v12 = vpop.permute.xlu0 %13   ;;  %v26_v13 = vpop.permute.xlu1 %25  }
  0x7d   :  { %16 = vst.msk [vmem:[#allocation0] sm:$0xf] %vm15_vm2, %v14_v12  }
  0x7e   :  { %22 = vst.msk [vmem:[#allocation0] sm:$0xf] %vm21_vm3, %v20_v11  }
  0x7f   :  { %28 = vst.msk [vmem:[#allocation0] sm:$0xf] %vm27_vm4, %v26_v13  }
  0x80   :  { %34 = vst.msk [vmem:[#allocation0] sm:$0xf] %vm33_vm5, %v32_v8  }
  0x81   :  { %40 = vst.msk [vmem:[#allocation0] sm:$0xf] %vm39_vm6, %v38_v9  }
  0x84   :  { %v44_v14 = vpop.permute.xlu0 %43  }
  0x85   :  { %46 = vst.msk [vmem:[#allocation0] sm:$0xf] %vm45_vm7, %v44_v14  }
  0x8c   :  { %v49_v15 = vld [vmem:[#allocation0] sm:$0xf] }
  0x8d   :  { %52 = vst [vmem:[%s112_s1] sm:$0xf] %v49_v15 }

// kernel: back_ce_loss.1
= control target key start
LH: loop header
LB: loop body
LE: loop exit
PB: predicated region body
PF: predicated region fallthrough
CT: control target
= control target key end

     0   :  { %s718_s18 = smov [#allocation5]   ;;  %s848_s0 = inlined_call_operand.vmem [shape: s32[6], index: 0, kind: input, shape index: {}]   ;;  %s849_s1 = inlined_call_operand.vmem [shape: f32[2,4,1,256], index: 1, kind: input, shape index: {}]   ;;  %s850_s2 = inlined_call_operand.vmem [shape: s32[2,1,256], index: 2, kind: input, shape index: {}]   ;;  %s851_s3 = inlined_call_operand.vmem [shape: f32[2,1,1,1], index: 3, kind: output, shape index: {0}]   ;;  %s852_s4 = inlined_call_operand.vmem [shape: f32[2,1,1,1], index: 4, kind: output, shape index: {1}]  }
   0x1   :  { %s11_s17 = sshll.u32 %s848_s0, 4  ;;  %s12_s17 = int_to_ptr.vmem [resolvable:$true] %s11_s17 }
   0x2   :  { %14 = dma.vmem_to_smem %s12_s17, 16, %s718_s18, [#allocation4] }
   0x3   :  { %704 = dma.done.wait [#allocation4], 16 }
   0x4   :  { %705 = vsyncadd [#allocation4], 4294967280 }
   0x5   :  { %17 = sfence }
   0x6   :  { %s748_s19 = smov 0   ;;  %s750_s20 = smov 0  }
   0x7   :  { %s752_s21 = smov 0  }
   0x8 LB: > { %s42_s0 = sadd.s32 1, %s712_s20  ;;  %p620_p0 = scmp.ge.s32.totalorder %s716_s21, 1  ;;  %s716_s21 = sphi %s752_s21, %s23_s21   ;;  %s712_s20 = sphi %s750_s20, %s860_s20   ;;  %s708_s19 = sphi %s748_s19, %s859_s19  }
   0x9   : > { %p44_p1 = scmp.ge.s32.totalorder %s42_s0, 2  ;;  %p216_p2 = scmp.lt.s32.totalorder %s716_s21, 3 }
   0xb   : > { %s862_s0 = smov (%p44_p1, %s42_s0), 0  ;;  %p217_p3 = pnand %p620_p0, %p216_p2 }
   0xc   : > { %p267_p4 = scmp.lt.s32.totalorder (!%p217_p3), %s708_s19, 1  ;;  %s766_s22 = sld [smem:[#allocation5]] (!%p217_p3) }
   0xd   : > { %220 = sbr.rel (%p217_p3) target bundleno = 273 (0x111), region = 28  ;;  %s776_s23 = sld [smem:[#allocation5 + $0x1]] (!%p217_p3) }
   0xe   : > { %s788_s6 = sld [smem:[#allocation5 + $0x4]] (!%p217_p3) }
   0xf   : > { %s791_s8 = sld [smem:[#allocation5 + $0x2]] (!%p217_p3) }
  0x10   : > { %s793_s9 = sld [smem:[#allocation5 + $0x3]] (!%p217_p3) }
  0x11   : > { %s798_s12 = sld [smem:[#allocation5 + $0x5]] (!%p217_p3) }
  0x12   : > { %v308_v0 = vlaneseq  ;;  %s864_s19 = smov (!%p267_p4, %s708_s19), 1  ;;  %v719_v2 = vmov 0.0   ;;  %s349_s7 = scvt.s32.f32 %s766_s22  ;;  %vm421_vm8 = vcmask 1040384   ;;  %vm467_vm9 = vcmask 0  }
  0x13   : > { %s621_s24 = sshll.u32 %s864_s19, 3  ;;  %s622_s25 = sshll.u32 %s864_s19, 1 }
  0x14   : > { %vm770_vm0 = vcmp.lt.s32.totalorder %v308_v0, 256  ;;  %s274_s28 = scalar_lea.vmem %s849_s1, %s621_s24  ;;  %s288_s5 = scalar_lea.vmem %s850_s2, %s622_s25  ;;  %v389_v9 = vand.u32 127, %v308_v0  ;;  %v387_v11 = vshrl.u32 %v308_v0, 7  ;;  %v350_v14 = vstv %s349_s7 }
  0x15   : > { %312 = vst.msk [vmem:[#allocation2] sm:$0x3] %vm770_vm0, %v719_v2  ;;  %v314_v3 = vld [vmem:[%s288_s5] sm:$0x3]  ;;  %v623_v5 = vld [vmem:[%s274_s28 + $0x2] sm:$0x3]  ;;  %s359_s10 = scvt.s32.f32 %s776_s23  ;;  %s369_s11 = scvt.s32.f32 %s791_s8 }
  0x16   : > { %313 = vst.msk [vmem:[#allocation3] sm:$0x3] %vm770_vm0, %v719_v2  ;;  %v315_v4 = vld [vmem:[%s274_s28] sm:$0x3]  ;;  %v624_v6 = vld [vmem:[%s274_s28 + $0x4] sm:$0x3]  ;;  %s379_s13 = scvt.s32.f32 %s793_s9  ;;  %s344_s14 = scvt.s32.f32 %s788_s6 }
  0x17   : > { %v322_v7 = vmax.f32 %v315_v4, %v623_v5  ;;  %v625_v8 = vld [vmem:[%s274_s28 + $0x6] sm:$0x3]  ;;  %vm340_vm1 = vcmp.eq.s32.totalorder %v314_v3, 255  ;;  %vm345_vm2 = vcmp.eq.s32.totalorder %v314_v3, 0  ;;  %v390_v15 = vadd.s32 128, %v389_v9  ;;  %s297_s17 = scalar_lea.vmem %s851_s3, %s864_s19  ;;  %s303_s24 = scalar_lea.vmem %s852_s4, %s864_s19 }
  0x18   : > { %v626_v13 = vsel %vm340_vm1, 1.0, %v719_v2  ;;  %v628_v20 = vsel %vm345_vm2, 1.0, %v719_v2  ;;  %vm355_vm3 = vcmp.eq.s32.totalorder %v314_v3, 1  ;;  %v360_v21 = vstv %s359_s10 }
  0x19   : > { %v323_v10 = vmax.f32 %v322_v7, %v624_v6  ;;  %v393_v22 = vmul.u32 256, %v387_v11  ;;  %v351_v27 = vmul.f32 %v626_v13, %v350_v14  ;;  %vm365_vm4 = vcmp.eq.s32.totalorder %v314_v3, 2 }
  0x1a   : > { %v370_v28 = vstv %s369_s11  ;;  %v361_v29 = vmul.f32 %v626_v13, %v360_v21  ;;  %vm375_vm5 = vcmp.eq.s32.totalorder %v314_v3, 3  ;;  %v380_v30 = vstv %s379_s13 }
  0x1b   : > { %v324_v12 = vmax.f32 %v323_v10, %v625_v8  ;;  %v629_v31 = vsel %vm355_vm3, 1.0, %v719_v2  ;;  %v371_v32 = vmul.f32 %v626_v13, %v370_v28  ;;  %v631_v33 = vsel %vm365_vm4, 1.0, %v719_v2 }
  0x1c   : > { %v381_v34 = vmul.f32 %v626_v13, %v380_v30  ;;  %v352_v35 = vadd.f32 %v628_v20, %v351_v27  ;;  %v633_v36 = vsel %vm375_vm5, 1.0, %v719_v2  ;;  %v400_v37 = vstv %s344_s14 }
  0x1d   : > { %v325_v16 = vsub.f32 %v315_v4, %v324_v12  ;;  %v328_v17 = vsub.f32 %v623_v5, %v324_v12  ;;  %v331_v18 = vsub.f32 %v624_v6, %v324_v12  ;;  %v334_v19 = vsub.f32 %v625_v8, %v324_v12  ;;  %v430_v62 = vld [vmem:[#allocation3] sm:$0x3] }
  0x1e   : > { %v362_v38 = vadd.f32 %v629_v31, %v361_v29  ;;  %v394_v39 = vadd.s32 %v393_v22, %v389_v9  ;;  %v395_v40 = vadd.s32 %v393_v22, %v390_v15  ;;  %v372_v41 = vadd.f32 %v631_v33, %v371_v32 }
  0x1f   : > { %v326_v23 = vmul.f32 1.442695, %v325_v16  ;;  %v329_v24 = vmul.f32 1.442695, %v328_v17  ;;  %v332_v25 = vmul.f32 1.442695, %v331_v18  ;;  %v397_v42 = vstv %s798_s12 }
  0x20   : > { %v335_v26 = vmul.f32 1.442695, %v334_v19  ;;  %v382_v44 = vadd.f32 %v633_v36, %v381_v34  ;;  %v401_v45 = vsel %vm340_vm1, %v400_v37, 1.0  ;;  %vm805_vm6 = vcmp.lt.s32.totalorder %v394_v39, %v397_v42  ;;  %v409_v18 = vld [vmem:[#allocation2] sm:$0x3] }
  0x21   : > { %668 = vpow2.f32 %v326_v23  ;;  %v432_v48 = vperm.slane %v401_v45, 0  ;;  %v433_v49 = vperm.slane %v401_v45, 1  ;;  %vm809_vm7 = vcmp.lt.s32.totalorder %v395_v40, %v397_v42 }
  0x22   : > { %670 = vpow2.f32 %v329_v24 }
  0x23   : > { %672 = vpow2.f32 %v332_v25  ;;  %v436_v57 = vsel %vm805_vm6, %v432_v48, 0.0  ;;  %v437_v58 = vsel %vm809_vm7, %v433_v49, 0.0 }
  0x24   : > { %674 = vpow2.f32 %v335_v26  ;;  %v440_v63 = vrot.slane %v437_v58, 7 }
  0x26   : > { %v441_v3 = vsel %vm421_vm8, %v436_v57, %v440_v63 }
  0x27   : > { %v669_v43 = vpop.eup %668  ;;  %v443_v4 = vadd.f32 %v441_v3, %v430_v62 }
  0x28   : > { %v671_v46 = vpop.eup %670  ;;  %v353_v47 = vmul.f32 %v669_v43, %v352_v35 }
  0x29   : > { %v673_v50 = vpop.eup %672  ;;  %v337_v51 = vadd.f32 %v671_v46, %v669_v43  ;;  %v363_v52 = vmul.f32 %v671_v46, %v362_v38  ;;  %444 = vst.msk [vmem:[#allocation3] sm:$0x3] %vm770_vm0, %v443_v4 }
  0x2a   : > { %v675_v55 = vpop.eup %674  ;;  %v373_v56 = vmul.f32 %v673_v50, %v372_v41 }
  0x2b   : > { %v338_v59 = vadd.f32 %v673_v50, %v337_v51  ;;  %v364_v60 = vadd.f32 %v363_v52, %v353_v47  ;;  %v383_v61 = vmul.f32 %v675_v55, %v382_v44 }
  0x2d   : > { %v339_v0 = vadd.f32 %v675_v55, %v338_v59  ;;  %v374_v2 = vadd.f32 %v373_v56, %v364_v60 }
  0x2f   : > { %v384_v5 = vadd.f32 %v383_v61, %v374_v2  ;;  %676 = vlog2.f32 %v339_v0  ;;  %v404_v6 = vmul.f32 1e-07, %v339_v0 }
  0x30   : > { %v469_v23 = vld [vmem:[#allocation3] sm:$0x3] }
  0x31   : > { %v405_v7 = vadd.f32 %v404_v6, %v384_v5  ;;  %v471_v28 = vperm.slane %v469_v23, 0  ;;  %v472_v29 = vperm.slane %v469_v23, 1 }
  0x33   : > { %678 = vlog2.f32 %v405_v7  ;;  %v475_v31 = vsel %vm421_vm8, %v471_v28, 0.0  ;;  %v476_v32 = vsel %vm421_vm8, %v472_v29, 0.0 }
  0x34   : > { %v477_v33 = vadd.f32 %v476_v32, %v475_v31 }
  0x35   : > { %v677_v8 = vpop.eup %676 }
  0x36   : > { %v403_v9 = vmul.f32 0.6931472, %v677_v8 }
  0x39   : > { %v679_v10 = vpop.eup %678 }
  0x3a   : > { %v407_v11 = vmul.f32 0.6931472, %v679_v10 }
  0x3c   : > { %v408_v12 = vsub.f32 %v403_v9, %v407_v11 }
  0x3e   : > { %v410_v13 = vmul.f32 %v408_v12, %v401_v45 }
  0x40   : > { %v412_v14 = vperm.slane %v410_v13, 0  ;;  %v413_v15 = vperm.slane %v410_v13, 1 }
  0x42   : > { %v416_v16 = vsel %vm805_vm6, %v412_v14, 0.0  ;;  %v417_v17 = vsel %vm809_vm7, %v413_v15, 0.0 }
  0x43   : > { %v420_v19 = vrot.slane %v417_v17, 7 }
  0x45   : > { %v422_v20 = vsel %vm421_vm8, %v416_v16, %v420_v19 }
  0x46   : > { %v424_v21 = vadd.f32 %v422_v20, %v409_v18 }
  0x48   : > { %429 = vst.msk [vmem:[#allocation2] sm:$0x3] %vm770_vm0, %v424_v21 }
  0x4f   : > { %v448_v22 = vld [vmem:[#allocation2] sm:$0x3] }
  0x50   : > { %v450_v24 = vperm.slane %v448_v22, 0  ;;  %v451_v25 = vperm.slane %v448_v22, 1 }
  0x52   : > { %v454_v26 = vsel %vm421_vm8, %v450_v24, 0.0  ;;  %v455_v27 = vsel %vm421_vm8, %v451_v25, 0.0 }
  0x53   : > { %v456_v30 = vadd.f32 %v455_v27, %v454_v26 }
  0x55   : > { %457 = vadd.xlane.f32.xlu0 %v456_v30 }
  0x5d   : > { %478 = vadd.xlane.f32.xlu0 %v477_v33 }
  0xc8   : > { %v458_v1 = vpop.xlane.xlu0 %457 }
  0xc9   : > { %v459_v34 = vrot.slane %v458_v1, 4 }
  0xcb   : > { %v460_v35 = vadd.f32 %v459_v34, %v458_v1 }
  0xcd   : > { %v461_v36 = vrot.slane %v460_v35, 2 }
  0xcf   : > { %v462_v37 = vadd.f32 %v461_v36, %v460_v35 }
  0xd0   : > { %v479_v38 = vpop.xlane.xlu0 %478 }
  0xd1   : > { %v480_v39 = vrot.slane %v479_v38, 4  ;;  %v463_v40 = vrot.slane %v462_v37, 1 }
  0xd3   : > { %v481_v41 = vadd.f32 %v480_v39, %v479_v38  ;;  %v464_v42 = vadd.f32 %v463_v40, %v462_v37 }
  0xd5   : > { %v482_v43 = vrot.slane %v481_v41, 2  ;;  %638 = vpush %v464_v42 }
  0xd7   : > { %v483_v44 = vadd.f32 %v482_v43, %v481_v41 }
  0xd9   : > { %v484_v45 = vrot.slane %v483_v44, 1 }
  0xdb   : > { %v485_v46 = vadd.f32 %v484_v45, %v483_v44 }
  0xdd   : > { %640 = vpush %v485_v46 }
 0x106   : > { %s639_s18 = spop %638 }
 0x107   : > { %v466_v47 = vstv %s639_s18 }
 0x108   : > { %468 = vst.msk [vmem:[%s297_s17] sm:$0x1] %vm467_vm9, %v466_v47 }
 0x10e   : > { %s641_s25 = spop %640 }
 0x10f   : > { %v487_v48 = vstv %s641_s25 }
 0x110   : > { %488 = vst.msk [vmem:[%s303_s24] sm:$0x1] %vm467_vm9, %v487_v48 }
 0x111 PF: > { %s23_s21 = sadd.s32 1, %s716_s21   ;;  %s859_s19 = smov %s712_s20 }
 0x112   : > { %p20_p5 = scmp.ge.s32.totalorder %s23_s21, 4   ;;  %s860_s20 = smov %s862_s0 }
 0x114   :  { %22 = sbr.rel (!%p20_p5) target bundleno = 8 (0x8), region = 84 }

</bundles_post_ra>
